<compile_context>
chip_gen: v7x
topology: tpu7x:2x2x1
jax: 0.10.0
libtpu: 0.0.40
codegen_flags: <defaults>
</compile_context>

<pallas_src>
import functools

import jax
import jax.numpy as jnp
from jax.experimental import pallas as pl
from jax.experimental.pallas import tpu as pltpu


def _round_up(n, m):
    return ((n + m - 1) // m) * m


def _mlp_kernel(x_ref, w1_ref, b1_ref, w2_ref, b2_ref, w3_ref, b3_ref, o_ref):
    # Hidden layer 1: (tb, obs) @ (obs, 64) + (1, 64) -> ReLU   (fp32 accum)
    h1 = jnp.dot(x_ref[...], w1_ref[...], preferred_element_type=jnp.float32)
    h1 = jnp.maximum(h1 + b1_ref[...], 0.0)
    # Hidden layer 2: (tb, 64) @ (64, 128) + (1, 128) -> ReLU
    h2 = jnp.dot(h1.astype(w2_ref.dtype), w2_ref[...],
                 preferred_element_type=jnp.float32)
    h2 = jnp.maximum(h2 + b2_ref[...], 0.0)
    # Output layer (out_dim == 1): instead of a degenerate (tb,128)@(128,1)
    # MXU matmul, transpose h2 (XLU) and do a VPU multiply + sublane reduce.
    # Result is a lane-dense (1, tb) row -> unmasked full-width stores.
    h2t = h2.T                                                  # (128, tb)
    out_row = jnp.sum(h2t * w3_ref[...], axis=0, keepdims=True) + b3_ref[...]
    o_ref[...] = out_row[None].astype(o_ref.dtype)              # (1, 1, tb)


@functools.partial(jax.jit, static_argnames=("tb", "use_bf16"))
def value_network_forward(x, params, *, tb=None, use_bf16=False):
    """Runs the ValueNetwork forward pass with a fused Pallas kernel.

    x: (B, obs_size) float32
    params: dict with w1 (obs,64), b1 (1,64), w2 (64,128), b2 (1,128),
            w3 (128,1), b3 (1,1)
    returns: (B, 1) float32
    """
    B, obs = x.shape
    w1, b1 = params["w1"], params["b1"]
    w2, b2 = params["w2"], params["b2"]
    w3, b3 = params["w3"], params["b3"]

    if tb is None:
        # Big lane-aligned batch tile.  Multiple of 128 keeps the in-kernel
        # transpose and the output stores fully lane-dense/unmasked.
        # NOTE(v7x): with 2 TensorCores, prefer a tb that yields >= 2 grid
        # steps once B > 128 (e.g. tb = round_up(cdiv(B, 2), 128)); sweep.
        tb = min(512, _round_up(B, 128))
    assert tb % 128 == 0, "tb must be a multiple of 128"

    num_tiles = pl.cdiv(B, tb)
    b_pad = num_tiles * tb

    if use_bf16:
        # bf16 MXU operands for the hidden layers (v6e/v7x native dtype);
        # fp32 accumulation / bias / ReLU / output layer preserved.
        x = x.astype(jnp.bfloat16)
        w1 = w1.astype(jnp.bfloat16)
        w2 = w2.astype(jnp.bfloat16)

    if b_pad != B:
        # Zero-pad the batch so no rows are silently dropped for arbitrary B.
        x = jnp.pad(x, ((0, b_pad - B), (0, 0)))

    def resident(arr):
        # Weights/biases are tiny: give every grid step the full array
        # (constant index_map -> stays resident in VMEM, DMA'd once).
        return pl.BlockSpec(arr.shape, lambda i: (0,) * arr.ndim)

    out = pl.pallas_call(
        _mlp_kernel,
        out_shape=jax.ShapeDtypeStruct((num_tiles, 1, tb), jnp.float32),
        grid_spec=pltpu.PrefetchScalarGridSpec(
            num_scalar_prefetch=0,
            grid=(num_tiles,),
            in_specs=[
                pl.BlockSpec((tb, obs), lambda i: (i, 0)),   # x tile
                resident(w1), resident(b1),                  # layer 1
                resident(w2), resident(b2),                  # layer 2
                resident(w3), resident(b3),                  # layer 3
            ],
            out_specs=pl.BlockSpec((1, 1, tb), lambda i: (i, 0, 0)),
        ),
        compiler_params=pltpu.CompilerParams(
            dimension_semantics=("parallel",)
        ),
    )(x, w1, b1, w2, b2, w3, b3)

    # Lane-dense (num_tiles, 1, tb) slab -> (B, 1).
    return out.reshape(b_pad, 1)[:B]


def init_params(key, obs_size, hl_dims=(64, 128)):
    """Deterministic init matching PyTorch nn.Linear's U(-1/sqrt(in), 1/sqrt(in))."""
    dims = [obs_size] + list(hl_dims) + [1]
    params = {}
    for idx in range(len(dims) - 1):
        in_d, out_d = dims[idx], dims[idx + 1]
        key, kw, kb = jax.random.split(key, 3)
        bound = 1.0 / jnp.sqrt(jnp.float32(in_d))
        params[f"w{idx+1}"] = jax.random.uniform(
            kw, (in_d, out_d), jnp.float32, -bound, bound)
        params[f"b{idx+1}"] = jax.random.uniform(
            kb, (1, out_d), jnp.float32, -bound, bound)
    return params


def reference_forward(x, params):
    hi = jax.lax.Precision.HIGHEST
    h = jnp.maximum(jnp.dot(x, params["w1"], precision=hi) + params["b1"], 0.0)
    h = jnp.maximum(jnp.dot(h, params["w2"], precision=hi) + params["b2"], 0.0)
    return jnp.dot(h, params["w3"], precision=hi) + params["b3"]


if __name__ == "__main__":
    B, OBS = 16, 32
    key = jax.random.PRNGKey(0)
    kx, kp = jax.random.split(key)

    x = jax.random.normal(kx, (B, OBS), jnp.float32)
    params = init_params(kp, OBS, hl_dims=(64, 128))

    ref = reference_forward(x, params)

    # Default fp32 path (v5e-friendly; tight match to the reference).
    out = jax.block_until_ready(value_network_forward(x, params))
    assert out.shape == (B, 1), out.shape
    assert jnp.allclose(out, ref, atol=1e-4, rtol=1e-4), (
        f"fp32 max abs err {jnp.max(jnp.abs(out - ref))}")

    # bf16-matmul path (v6e/v7x MXU-native); fp32 accumulation keeps it close.
    out_bf16 = jax.block_until_ready(
        value_network_forward(x, params, use_bf16=True))
    assert out_bf16.shape == (B, 1), out_bf16.shape
    assert jnp.allclose(out_bf16, ref, atol=5e-2, rtol=5e-2), (
        f"bf16 max abs err {jnp.max(jnp.abs(out_bf16 - ref))}")

    print("KERNEL_OK")
</pallas_src>

<mosaic_0001>
module attributes {stable_mosaic.version = 11 : i64} {
  func.func @_mlp_kernel(%arg0: i32, %arg1: memref<128x32xf32, #tpu.memory_space<vmem>>, %arg2: memref<32x64xf32, #tpu.memory_space<vmem>>, %arg3: memref<1x64xf32, #tpu.memory_space<vmem>>, %arg4: memref<64x128xf32, #tpu.memory_space<vmem>>, %arg5: memref<1x128xf32, #tpu.memory_space<vmem>>, %arg6: memref<128x1xf32, #tpu.memory_space<vmem>>, %arg7: memref<1x1xf32, #tpu.memory_space<vmem>>, %arg8: memref<1x1x128xf32, #tpu.memory_space<vmem>>) attributes {dimension_semantics = [#tpu.dimension_semantics<parallel>], iteration_bounds = array<i64: 1>, scalar_prefetch = 0 : i64, scratch_operands = 0 : i64, tpu.core_type = #tpu.core_type<tc>, window_params = [{transform_indices = @transform_0, window_bounds = array<i64: 128, 32>}, {pipeline_mode = #tpu.pipeline_mode<synchronous>, transform_indices = @transform_1, window_bounds = array<i64: 32, 64>}, {pipeline_mode = #tpu.pipeline_mode<synchronous>, transform_indices = @transform_2, window_bounds = array<i64: 1, 64>}, {pipeline_mode = #tpu.pipeline_mode<synchronous>, transform_indices = @transform_3, window_bounds = array<i64: 64, 128>}, {pipeline_mode = #tpu.pipeline_mode<synchronous>, transform_indices = @transform_4, window_bounds = array<i64: 1, 128>}, {pipeline_mode = #tpu.pipeline_mode<synchronous>, transform_indices = @transform_5, window_bounds = array<i64: 128, 1>}, {pipeline_mode = #tpu.pipeline_mode<synchronous>, transform_indices = @transform_6, window_bounds = array<i64: 1, 1>}, {transform_indices = @transform_7, window_bounds = array<i64: 1, 1, 128>}]} {
    %c0 = arith.constant 0 : index
    %c0_0 = arith.constant 0 : index
    %0 = vector.load %arg1[%c0, %c0_0] : memref<128x32xf32, #tpu.memory_space<vmem>>, vector<128x32xf32>
    %c0_1 = arith.constant 0 : index
    %c0_2 = arith.constant 0 : index
    %1 = vector.load %arg2[%c0_1, %c0_2] : memref<32x64xf32, #tpu.memory_space<vmem>>, vector<32x64xf32>
    %cst = arith.constant dense<0.000000e+00> : vector<128x64xf32>
    %2 = tpu.matmul %0, %1, %cst {dimension_numbers = #tpu.dot_dimension_numbers<[1], [0], [0], [1], [0, 0, 1, 1], [], []>} : vector<128x32xf32>, vector<32x64xf32>, vector<128x64xf32> -> vector<128x64xf32>
    %c0_3 = arith.constant 0 : index
    %c0_4 = arith.constant 0 : index
    %3 = vector.load %arg3[%c0_3, %c0_4] : memref<1x64xf32, #tpu.memory_space<vmem>>, vector<1x64xf32>
    %4 = vector.broadcast %3 : vector<1x64xf32> to vector<128x64xf32>
    %5 = arith.addf %2, %4 : vector<128x64xf32>
    %cst_5 = arith.constant 0.000000e+00 : f32
    %6 = vector.broadcast %cst_5 : f32 to vector<128x64xf32>
    %7 = arith.maximumf %5, %6 : vector<128x64xf32>
    %c0_6 = arith.constant 0 : index
    %c0_7 = arith.constant 0 : index
    %8 = vector.load %arg4[%c0_6, %c0_7] : memref<64x128xf32, #tpu.memory_space<vmem>>, vector<64x128xf32>
    %cst_8 = arith.constant dense<0.000000e+00> : vector<128x128xf32>
    %9 = tpu.matmul %7, %8, %cst_8 {dimension_numbers = #tpu.dot_dimension_numbers<[1], [0], [0], [1], [0, 0, 1, 1], [], []>} : vector<128x64xf32>, vector<64x128xf32>, vector<128x128xf32> -> vector<128x128xf32>
    %c0_9 = arith.constant 0 : index
    %c0_10 = arith.constant 0 : index
    %10 = vector.load %arg5[%c0_9, %c0_10] : memref<1x128xf32, #tpu.memory_space<vmem>>, vector<1x128xf32>
    %11 = vector.broadcast %10 : vector<1x128xf32> to vector<128x128xf32>
    %12 = arith.addf %9, %11 : vector<128x128xf32>
    %cst_11 = arith.constant 0.000000e+00 : f32
    %13 = vector.broadcast %cst_11 : f32 to vector<128x128xf32>
    %14 = arith.maximumf %12, %13 : vector<128x128xf32>
    %15 = tpu.transpose %14, [1, 0] : vector<128x128xf32> -> vector<128x128xf32>
    %c0_12 = arith.constant 0 : index
    %c0_13 = arith.constant 0 : index
    %16 = vector.load %arg6[%c0_12, %c0_13] : memref<128x1xf32, #tpu.memory_space<vmem>>, vector<128x1xf32>
    %17 = vector.broadcast %16 : vector<128x1xf32> to vector<128x128xf32>
    %18 = arith.mulf %15, %17 : vector<128x128xf32>
    %cst_14 = arith.constant dense<0.000000e+00> : vector<128xf32>
    %19 = vector.multi_reduction <add>, %18, %cst_14 [0] : vector<128x128xf32> to vector<128xf32>
    %20 = vector.shape_cast %19 : vector<128xf32> to vector<1x128xf32>
    %c0_15 = arith.constant 0 : index
    %c0_16 = arith.constant 0 : index
    %21 = vector.load %arg7[%c0_15, %c0_16] : memref<1x1xf32, #tpu.memory_space<vmem>>, vector<1x1xf32>
    %22 = vector.broadcast %21 : vector<1x1xf32> to vector<1x128xf32>
    %23 = arith.addf %20, %22 : vector<1x128xf32>
    %24 = vector.shape_cast %23 : vector<1x128xf32> to vector<1x1x128xf32>
    %c0_17 = arith.constant 0 : index
    %c0_18 = arith.constant 0 : index
    %c0_19 = arith.constant 0 : index
    %25 = vector.load %arg8[%c0_17, %c0_18, %c0_19] : memref<1x1x128xf32, #tpu.memory_space<vmem>>, vector<1x1x128xf32>
    tpu.vector_store %arg8[%c0_17, %c0_18, %c0_19], %24 {strides = array<i32>} : memref<1x1x128xf32, #tpu.memory_space<vmem>>, vector<1x1x128xf32>,
    return
  }
  func.func @transform_0(%arg0: i32) -> (i32, i32) {
    %c0_i32 = arith.constant 0 : i32
    %c0_i32_0 = arith.constant 0 : i32
    return %arg0, %c0_i32 : i32, i32
  }
  func.func @transform_1(%arg0: i32) -> (i32, i32) {
    %c0_i32 = arith.constant 0 : i32
    %c0_i32_0 = arith.constant 0 : i32
    %c0_i32_1 = arith.constant 0 : i32
    return %c0_i32, %c0_i32_0 : i32, i32
  }
  func.func @transform_2(%arg0: i32) -> (i32, i32) {
    %c0_i32 = arith.constant 0 : i32
    %c0_i32_0 = arith.constant 0 : i32
    %c0_i32_1 = arith.constant 0 : i32
    return %c0_i32, %c0_i32_0 : i32, i32
  }
  func.func @transform_3(%arg0: i32) -> (i32, i32) {
    %c0_i32 = arith.constant 0 : i32
    %c0_i32_0 = arith.constant 0 : i32
    %c0_i32_1 = arith.constant 0 : i32
    return %c0_i32, %c0_i32_0 : i32, i32
  }
  func.func @transform_4(%arg0: i32) -> (i32, i32) {
    %c0_i32 = arith.constant 0 : i32
    %c0_i32_0 = arith.constant 0 : i32
    %c0_i32_1 = arith.constant 0 : i32
    return %c0_i32, %c0_i32_0 : i32, i32
  }
  func.func @transform_5(%arg0: i32) -> (i32, i32) {
    %c0_i32 = arith.constant 0 : i32
    %c0_i32_0 = arith.constant 0 : i32
    %c0_i32_1 = arith.constant 0 : i32
    return %c0_i32, %c0_i32_0 : i32, i32
  }
  func.func @transform_6(%arg0: i32) -> (i32, i32) {
    %c0_i32 = arith.constant 0 : i32
    %c0_i32_0 = arith.constant 0 : i32
    %c0_i32_1 = arith.constant 0 : i32
    return %c0_i32, %c0_i32_0 : i32, i32
  }
  func.func @transform_7(%arg0: i32) -> (i32, i32, i32) {
    %c0_i32 = arith.constant 0 : i32
    %c0_i32_0 = arith.constant 0 : i32
    %c0_i32_1 = arith.constant 0 : i32
    return %arg0, %c0_i32, %c0_i32_0 : i32, i32, i32
  }
}

</mosaic_0001>

<bundles_post_ra>
// kernel: value_network_forward.1
= control target key start
LH: loop header
LB: loop body
LE: loop exit
PB: predicated region body
PF: predicated region fallthrough
CT: control target
= control target key end

     0   :  { %vm55_vm0 = vcmask 261120   ;;  %v856_v34 = vmov 0   ;;  %vm280_vm1 = vcmask 523264   ;;  %s1075_s1 = inlined_call_operand.vmem [shape: f32[32,64], index: 1, kind: input, shape index: {}]   ;;  %s1076_s0 = inlined_call_operand.vmem [shape: f32[128,32], index: 0, kind: input, shape index: {}]   ;;  %s1077_s3 = inlined_call_operand.vmem [shape: f32[64,128], index: 3, kind: input, shape index: {}]   ;;  %s1078_s5 = inlined_call_operand.vmem [shape: f32[128,1], index: 5, kind: input, shape index: {}]   ;;  %s1079_s2 = inlined_call_operand.vmem [shape: f32[1,64], index: 2, kind: input, shape index: {}]   ;;  %s1080_s6 = inlined_call_operand.<no memory space> [shape: f32[1,1], index: 6, kind: input, shape index: {}]   ;;  %s1081_s4 = inlined_call_operand.vmem [shape: f32[1,128], index: 4, kind: input, shape index: {}]   ;;  %s1082_s7 = inlined_call_operand.vmem [shape: f32[1,1,128], index: 7, kind: output, shape index: {}]  }
   0x1   :  { %v44_v0 = vld [vmem:[%s1075_s1] sm:$0xff]  ;;  %v45_v1 = vld [vmem:[%s1075_s1 + $0x8] sm:$0xff]  ;;  %v46_v2 = vld [vmem:[%s1075_s1 + $0x10] sm:$0xff]  ;;  %854 = vset.pattern.permute.xlu1 %v856_v34 }
   0x2   :  { %v821_v3 = vpack.c.bf16 %v45_v1, %v44_v0  ;;  %v47_v4 = vld [vmem:[%s1075_s1 + $0x18] sm:$0xff]  ;;  %v28_v5 = vld [vmem:[%s1076_s0] sm:$0xff]  ;;  %v266_v8 = vld [vmem:[%s1077_s3 + $0x8] sm:$0xff] }
   0x3   :  { %v825_v6 = vpack.c.bf16 %v47_v4, %v46_v2  ;;  %757 = vmatprep.mubr.msk.f32.mxu0 %vm55_vm0, %v28_v5  ;;  %v265_v7 = vld [vmem:[%s1077_s3] sm:$0xff]  ;;  %v267_v9 = vld [vmem:[%s1077_s3 + $0x10] sm:$0xff]  ;;  %v268_v10 = vld [vmem:[%s1077_s3 + $0x18] sm:$0xff] }
   0x4   :  { %822 = vmatprep.subr.bf16.mxu0 %v821_v3  ;;  %v29_v11 = vld [vmem:[%s1076_s0 + $0x8] sm:$0xff]  ;;  %v829_v12 = vpack.c.bf16 %v266_v8, %v265_v7  ;;  %v30_v13 = vld [vmem:[%s1076_s0 + $0x10] sm:$0xff]  ;;  %v833_v14 = vpack.c.bf16 %v268_v10, %v267_v9  ;;  %v269_v15 = vld [vmem:[%s1077_s3 + $0x20] sm:$0xff] }
   0x5   :  { %824 = vmatpush3.bf16.msra.mxu0 %v821_v3  ;;  %v270_v16 = vld [vmem:[%s1077_s3 + $0x28] sm:$0xff]  ;;  %v31_v17 = vld [vmem:[%s1076_s0 + $0x18] sm:$0xff]  ;;  %v32_v18 = vld [vmem:[%s1076_s0 + $0x20] sm:$0xff] }
   0x6   :  { %826 = vmatprep.subr.bf16.mxu0 %v825_v6  ;;  %845 = vmatprep.subr.bf16.mxu1 %v829_v12  ;;  %v837_v19 = vpack.c.bf16 %v270_v16, %v269_v15  ;;  %v271_v20 = vld [vmem:[%s1077_s3 + $0x30] sm:$0xff]  ;;  %v272_v21 = vld [vmem:[%s1077_s3 + $0x38] sm:$0xff]  ;;  %v33_v22 = vld [vmem:[%s1076_s0 + $0x28] sm:$0xff] }
   0x7   :  { %849 = vmatpush3.bf16.msra.mxu1 %v829_v12  ;;  %v34_v23 = vld [vmem:[%s1076_s0 + $0x30] sm:$0xff]  ;;  %v841_v24 = vpack.c.bf16 %v272_v21, %v271_v20  ;;  %v35_v25 = vld [vmem:[%s1076_s0 + $0x38] sm:$0xff]  ;;  %v36_v26 = vld [vmem:[%s1076_s0 + $0x40] sm:$0xff] }
   0x8   :  { %846 = vmatprep.subr.bf16.mxu1 %v833_v14  ;;  %v37_v27 = vld [vmem:[%s1076_s0 + $0x48] sm:$0xff]  ;;  %v38_v28 = vld [vmem:[%s1076_s0 + $0x50] sm:$0xff]  ;;  %v39_v29 = vld [vmem:[%s1076_s0 + $0x58] sm:$0xff] }
   0x9   :  { %828 = vmatpush3.bf16.msra.mxu0 %v825_v6  ;;  %v40_v30 = vld [vmem:[%s1076_s0 + $0x60] sm:$0xff]  ;;  %v41_v31 = vld [vmem:[%s1076_s0 + $0x68] sm:$0xff]  ;;  %v42_v32 = vld [vmem:[%s1076_s0 + $0x70] sm:$0xff] }
   0xa   :  { %830 = vmatprep.subr.bf16.mxu0 %v829_v12  ;;  %v43_v33 = vld [vmem:[%s1076_s0 + $0x78] sm:$0xff]  ;;  %v522_v35 = vld [vmem:[%s1078_s5] sm:$0xff]  ;;  %v523_v36 = vld [vmem:[%s1078_s5 + $0x8] sm:$0xff] }
   0xb   :  { %850 = vmatpush3.bf16.msra.mxu1 %v833_v14  ;;  %540 = vperm.xlu1 %854, %v522_v35   ;;  %v524_v37 = vld [vmem:[%s1078_s5 + $0x10] sm:$0xff]  ;;  %v525_v38 = vld [vmem:[%s1078_s5 + $0x18] sm:$0xff]  ;;  %v526_v39 = vld [vmem:[%s1078_s5 + $0x20] sm:$0xff] }
   0xc   :  { %758 = vmatmul.mubr.msk.f32.vlgmr.msra.gmra.mrb[0].mxu0 %vm55_vm0, %v29_v11  ;;  %847 = vmatprep.subr.bf16.mxu1 %v837_v19  ;;  %v527_v40 = vld [vmem:[%s1078_s5 + $0x28] sm:$0xff]  ;;  %v528_v41 = vld [vmem:[%s1078_s5 + $0x30] sm:$0xff]  ;;  %v671_v42 = vld [vmem:[%s1079_s2] ss:$0 sm:$0xff] }
   0xd   :  { %760 = vmatprep.mubr.msk.f32.mxu0 %vm55_vm0, %v30_v13  ;;  %832 = vmatpush3.bf16.msra.mxu0 %v829_v12  ;;  %v536_v35 = vld [vmem:[%s1078_s5 + $0x70] sm:$0xff] }
   0xe   :  { %834 = vmatprep.subr.bf16.mxu0 %v833_v14 }
   0xf   :  { %851 = vmatpush3.bf16.msra.mxu1 %v837_v19  ;;  %545 = vperm.xlu1 %854, %v523_v36   ;;  %v537_v36 = vld [vmem:[%s1078_s5 + $0x78] sm:$0xff] }
  0x10   :  { %761 = vmatmul.mubr.msk.f32.gmra.mrb[2].mxu0 %vm55_vm0, %v31_v17  ;;  %848 = vmatprep.subr.bf16.mxu1 %v841_v24 }
  0x11   :  { %763 = vmatprep.mubr.msk.f32.mxu0 %vm55_vm0, %v32_v18  ;;  %836 = vmatpush3.bf16.msra.mxu0 %v833_v14 }
  0x12   :  { %838 = vmatprep.subr.bf16.mxu0 %v837_v19 }
  0x13   :  { %852 = vmatpush3.bf16.msra.mxu1 %v841_v24  ;;  %550 = vperm.xlu1 %854, %v524_v37   ;;  %v12_v37 = vstv %s1080_s6 }
  0x14   :  { %764 = vmatmul.mubr.msk.f32.gmra.mrb[4].mxu0 %vm55_vm0, %v33_v22  ;;  %13 = vst [vmem:[#allocation2] sm:$0x1] %v12_v37 }
  0x15   :  { %766 = vmatprep.mubr.msk.f32.mxu0 %vm55_vm0, %v34_v23  ;;  %840 = vmatpush3.bf16.msra.mxu0 %v837_v19 }
  0x16   :  { %842 = vmatprep.subr.bf16.mxu0 %v841_v24 }
  0x17   :  { %555 = vperm.xlu1 %854, %v525_v38   ;;  %v688_v38 = vld [vmem:[%s1081_s4] ss:$0 sm:$0xff] }
  0x18   :  { %767 = vmatmul.mubr.msk.f32.gmra.mrb[6].mxu0 %vm55_vm0, %v35_v25 }
  0x19   :  { %769 = vmatprep.mubr.msk.f32.mxu0 %vm55_vm0, %v36_v26  ;;  %844 = vmatpush3.bf16.msra.mxu0 %v841_v24 }
  0x1b   :  { %560 = vperm.xlu1 %854, %v526_v39  }
  0x1c   :  { %770 = vmatmul.mubr.msk.f32.gmra.mrb[8].mxu0 %vm55_vm0, %v37_v27  ;;  %v529_v27 = vld [vmem:[%s1078_s5 + $0x38] sm:$0xff] }
  0x1d   :  { %772 = vmatprep.mubr.msk.f32.mxu0 %vm55_vm0, %v38_v28  ;;  %v530_v28 = vld [vmem:[%s1078_s5 + $0x40] sm:$0xff] }
  0x1f   :  { %565 = vperm.xlu1 %854, %v527_v40  }
  0x20   :  { %773 = vmatmul.mubr.msk.f32.gmra.mrb[10].mxu0 %vm55_vm0, %v39_v29  ;;  %v531_v29 = vld [vmem:[%s1078_s5 + $0x48] sm:$0xff] }
  0x21   :  { %775 = vmatprep.mubr.msk.f32.mxu0 %vm55_vm0, %v40_v30  ;;  %v532_v30 = vld [vmem:[%s1078_s5 + $0x50] sm:$0xff] }
  0x23   :  { %570 = vperm.xlu1 %854, %v528_v41  }
  0x24   :  { %776 = vmatmul.mubr.msk.f32.gmra.mrb[12].mxu0 %vm55_vm0, %v41_v31  ;;  %v533_v31 = vld [vmem:[%s1078_s5 + $0x58] sm:$0xff] }
  0x25   :  { %778 = vmatprep.mubr.msk.f32.mxu0 %vm55_vm0, %v42_v32  ;;  %v534_v32 = vld [vmem:[%s1078_s5 + $0x60] sm:$0xff] }
  0x27   :  { %575 = vperm.xlu1 %854, %v529_v27  }
  0x28   :  { %779 = vmatmul.mubr.msk.f32.gmra.mrb[14].mxu0 %vm55_vm0, %v43_v33  ;;  %v535_v33 = vld [vmem:[%s1078_s5 + $0x68] sm:$0xff] }
  0x2b   :  { %580 = vperm.xlu1 %854, %v530_v28  }
  0x2f   :  { %585 = vperm.xlu1 %854, %v531_v29  }
  0x33   :  { %590 = vperm.xlu1 %854, %v532_v30  }
  0x37   :  { %595 = vperm.xlu1 %854, %v533_v31  }
  0x3b   :  { %600 = vperm.xlu1 %854, %v534_v32  }
  0x3f   :  { %605 = vperm.xlu1 %854, %v535_v33  }
  0x43   :  { %610 = vperm.xlu1 %854, %v536_v35  }
  0x47   :  { %615 = vperm.xlu1 %854, %v537_v36  }
  0xdf   :  { %v759_v43 = vpop.f32.mrb[0].mxu0 }
  0xe0   :  { %v176_v44 = vadd.f32 %v759_v43, %v671_v42  ;;  %v170_v45 = vpop.f32.mrb[1].mxu0 }
  0xe1   :  { %v171_v46 = vadd.f32 %v671_v42, %v170_v45 }
  0xe2   :  { %v250_v49 = vmax.f32 %v176_v44, 0.0 }
  0xe3   :  { %v249_v47 = vmax.f32 %v171_v46, 0.0  ;;  %v762_v48 = vpop.f32.mrb[2].mxu0 }
  0xe4   :  { %v186_v50 = vadd.f32 %v762_v48, %v671_v42  ;;  %v180_v51 = vpop.f32.mrb[3].mxu0 }
  0xe5   :  { %v181_v52 = vadd.f32 %v671_v42, %v180_v51  ;;  %797 = vmatprep.mubr.msk.f32.mxu0 %vm280_vm1, %v249_v47 }
  0xe6   :  { %v252_v53 = vmax.f32 %v186_v50, 0.0  ;;  %798 = vmatmul.mubr.msk.f32.vlgmr.msra.gmra.mrb[16].mxu0 %vm280_vm1, %v250_v49 }
  0xe7   :  { %v251_v54 = vmax.f32 %v181_v52, 0.0  ;;  %v765_v55 = vpop.f32.mrb[4].mxu0 }
  0xe8   :  { %v196_v56 = vadd.f32 %v765_v55, %v671_v42  ;;  %v190_v57 = vpop.f32.mrb[5].mxu0 }
  0xe9   :  { %800 = vmatprep.mubr.msk.f32.mxu1 %vm280_vm1, %v251_v54  ;;  %v191_v58 = vadd.f32 %v671_v42, %v190_v57 }
  0xea   :  { %801 = vmatmul.mubr.msk.f32.vlgmr.msra.gmra.mrb[0].mxu1 %vm280_vm1, %v252_v53  ;;  %v254_v59 = vmax.f32 %v196_v56, 0.0 }
  0xeb   :  { %v253_v60 = vmax.f32 %v191_v58, 0.0  ;;  %v768_v61 = vpop.f32.mrb[6].mxu0 }
  0xec   :  { %v206_v62 = vadd.f32 %v768_v61, %v671_v42  ;;  %v200_v63 = vpop.f32.mrb[7].mxu0 }
  0xed   :  { %803 = vmatprep.mubr.msk.f32.mxu1 %vm280_vm1, %v253_v60  ;;  %v201_v0 = vadd.f32 %v671_v42, %v200_v63 }
  0xee   :  { %804 = vmatmul.mubr.msk.f32.gmra.mrb[2].mxu1 %vm280_vm1, %v254_v59  ;;  %v256_v1 = vmax.f32 %v206_v62, 0.0 }
  0xef   :  { %v255_v2 = vmax.f32 %v201_v0, 0.0  ;;  %v771_v3 = vpop.f32.mrb[8].mxu0 }
  0xf0   :  { %v216_v4 = vadd.f32 %v771_v3, %v671_v42  ;;  %v210_v5 = vpop.f32.mrb[9].mxu0 }
  0xf1   :  { %806 = vmatprep.mubr.msk.f32.mxu1 %vm280_vm1, %v255_v2  ;;  %v211_v6 = vadd.f32 %v671_v42, %v210_v5 }
  0xf2   :  { %807 = vmatmul.mubr.msk.f32.gmra.mrb[4].mxu1 %vm280_vm1, %v256_v1  ;;  %v258_v7 = vmax.f32 %v216_v4, 0.0 }
  0xf3   :  { %v257_v8 = vmax.f32 %v211_v6, 0.0  ;;  %v774_v9 = vpop.f32.mrb[10].mxu0 }
  0xf4   :  { %v226_v10 = vadd.f32 %v774_v9, %v671_v42  ;;  %v220_v11 = vpop.f32.mrb[11].mxu0 }
  0xf5   :  { %809 = vmatprep.mubr.msk.f32.mxu1 %vm280_vm1, %v257_v8  ;;  %v221_v12 = vadd.f32 %v671_v42, %v220_v11 }
  0xf6   :  { %810 = vmatmul.mubr.msk.f32.gmra.mrb[6].mxu1 %vm280_vm1, %v258_v7  ;;  %v260_v13 = vmax.f32 %v226_v10, 0.0 }
  0xf7   :  { %v259_v14 = vmax.f32 %v221_v12, 0.0  ;;  %v777_v15 = vpop.f32.mrb[12].mxu0 }
  0xf8   :  { %v236_v16 = vadd.f32 %v777_v15, %v671_v42  ;;  %v230_v17 = vpop.f32.mrb[13].mxu0 }
  0xf9   :  { %812 = vmatprep.mubr.msk.f32.mxu1 %vm280_vm1, %v259_v14  ;;  %v231_v18 = vadd.f32 %v671_v42, %v230_v17 }
  0xfa   :  { %813 = vmatmul.mubr.msk.f32.gmra.mrb[8].mxu1 %vm280_vm1, %v260_v13  ;;  %v262_v19 = vmax.f32 %v236_v16, 0.0 }
  0xfb   :  { %v261_v20 = vmax.f32 %v231_v18, 0.0  ;;  %v780_v21 = vpop.f32.mrb[14].mxu0 }
  0xfc   :  { %v246_v22 = vadd.f32 %v780_v21, %v671_v42  ;;  %v240_v23 = vpop.f32.mrb[15].mxu0 }
  0xfd   :  { %815 = vmatprep.mubr.msk.f32.mxu1 %vm280_vm1, %v261_v20  ;;  %v241_v24 = vadd.f32 %v671_v42, %v240_v23  ;;  %v655_v23 = vld [vmem:[#allocation2] sm:$0x1] }
  0xfe   :  { %816 = vmatmul.mubr.msk.f32.gmra.mrb[10].mxu1 %vm280_vm1, %v262_v19  ;;  %v264_v25 = vmax.f32 %v246_v22, 0.0 }
  0xff   :  { %v263_v26 = vmax.f32 %v241_v24, 0.0  ;;  %v541_v24 = vpop.permute.xlu1 %540 }
 0x101   :  { %818 = vmatprep.mubr.msk.f32.mxu1 %vm280_vm1, %v263_v26 }
 0x102   :  { %819 = vmatmul.mubr.msk.f32.gmra.mrb[12].mxu1 %vm280_vm1, %v264_v25 }
 0x103   :  { %v546_v25 = vpop.permute.xlu1 %545 }
 0x107   :  { %v551_v26 = vpop.permute.xlu1 %550 }
 0x10b   :  { %v556_v28 = vpop.permute.xlu1 %555 }
 0x10f   :  { %v561_v30 = vpop.permute.xlu1 %560 }
 0x113   :  { %v566_v33 = vpop.permute.xlu1 %565 }
 0x117   :  { %v571_v36 = vpop.permute.xlu1 %570 }
 0x1b9   :  { %v799_v39 = vpop.f32.mrb[16].mxu0 }
 0x1ba   :  { %v395_v40 = vpop.f32.mrb[17].mxu0  ;;  %v401_v42 = vadd.f32 %v799_v39, %v688_v38  ;;  %v576_v39 = vpop.permute.xlu1 %575 }
 0x1bb   :  { %v396_v41 = vadd.f32 %v688_v38, %v395_v40 }
 0x1bc   :  { %v475_v46 = vmax.f32 %v401_v42, 0.0 }
 0x1bd   :  { %v802_v43 = vpop.f32.mrb[0].mxu1  ;;  %v474_v44 = vmax.f32 %v396_v41, 0.0 }
 0x1be   :  { %v405_v45 = vpop.f32.mrb[1].mxu1  ;;  %v411_v50 = vadd.f32 %v802_v43, %v688_v38  ;;  %v581_v41 = vpop.permute.xlu1 %580 }
 0x1bf   :  { %490 = vxpose.xlu0.b32.start [1/16] %v474_v44, 128  ;;  %v406_v47 = vadd.f32 %v688_v38, %v405_v45 }
 0x1c0   :  { %v477_v54 = vmax.f32 %v411_v50, 0.0 }
 0x1c1   :  { %v805_v48 = vpop.f32.mrb[2].mxu1  ;;  %v476_v51 = vmax.f32 %v406_v47, 0.0 }
 0x1c2   :  { %v415_v49 = vpop.f32.mrb[3].mxu1  ;;  %v421_v58 = vadd.f32 %v805_v48, %v688_v38  ;;  %v586_v45 = vpop.permute.xlu1 %585 }
 0x1c3   :  { %491 = vxpose.xlu0.b32.cont [2/16] %v475_v46, 128  ;;  %v416_v55 = vadd.f32 %v688_v38, %v415_v49 }
 0x1c4   :  { %v479_v62 = vmax.f32 %v421_v58, 0.0 }
 0x1c5   :  { %v808_v52 = vpop.f32.mrb[4].mxu1  ;;  %v478_v59 = vmax.f32 %v416_v55, 0.0 }
 0x1c6   :  { %v425_v53 = vpop.f32.mrb[5].mxu1  ;;  %v431_v2 = vadd.f32 %v808_v52, %v688_v38 }
 0x1c7   :  { %492 = vxpose.xlu0.b32.cont [3/16] %v476_v51, 128  ;;  %v426_v63 = vadd.f32 %v688_v38, %v425_v53  ;;  %v591_v51 = vpop.permute.xlu1 %590 }
 0x1c8   :  { %v481_v6 = vmax.f32 %v431_v2, 0.0 }
 0x1c9   :  { %v811_v56 = vpop.f32.mrb[6].mxu1  ;;  %v480_v3 = vmax.f32 %v426_v63, 0.0 }
 0x1ca   :  { %v435_v57 = vpop.f32.mrb[7].mxu1  ;;  %v441_v8 = vadd.f32 %v811_v56, %v688_v38 }
 0x1cb   :  { %493 = vxpose.xlu0.b32.cont [4/16] %v477_v54, 128  ;;  %v436_v7 = vadd.f32 %v688_v38, %v435_v57  ;;  %v596_v55 = vpop.permute.xlu1 %595 }
 0x1cc   :  { %v483_v10 = vmax.f32 %v441_v8, 0.0 }
 0x1cd   :  { %v814_v60 = vpop.f32.mrb[8].mxu1  ;;  %v482_v9 = vmax.f32 %v436_v7, 0.0 }
 0x1ce   :  { %v445_v61 = vpop.f32.mrb[9].mxu1  ;;  %v451_v12 = vadd.f32 %v814_v60, %v688_v38 }
 0x1cf   :  { %494 = vxpose.xlu0.b32.cont [5/16] %v478_v59, 128  ;;  %v446_v11 = vadd.f32 %v688_v38, %v445_v61  ;;  %v601_v61 = vpop.permute.xlu1 %600 }
 0x1d0   :  { %v485_v14 = vmax.f32 %v451_v12, 0.0 }
 0x1d1   :  { %v817_v0 = vpop.f32.mrb[10].mxu1  ;;  %v484_v13 = vmax.f32 %v446_v11, 0.0 }
 0x1d2   :  { %v455_v1 = vpop.f32.mrb[11].mxu1  ;;  %v461_v16 = vadd.f32 %v817_v0, %v688_v38 }
 0x1d3   :  { %495 = vxpose.xlu0.b32.cont [6/16] %v479_v62, 128  ;;  %v456_v15 = vadd.f32 %v688_v38, %v455_v1  ;;  %v606_v2 = vpop.permute.xlu1 %605 }
 0x1d4   :  { %v487_v18 = vmax.f32 %v461_v16, 0.0 }
 0x1d5   :  { %v820_v4 = vpop.f32.mrb[12].mxu1  ;;  %v486_v17 = vmax.f32 %v456_v15, 0.0 }
 0x1d6   :  { %v465_v5 = vpop.f32.mrb[13].mxu1  ;;  %v471_v20 = vadd.f32 %v820_v4, %v688_v38 }
 0x1d7   :  { %496 = vxpose.xlu0.b32.cont [7/16] %v480_v3, 128  ;;  %v466_v19 = vadd.f32 %v688_v38, %v465_v5 }
 0x1d8   :  { %v489_v22 = vmax.f32 %v471_v20, 0.0 }
 0x1d9   :  { %v488_v21 = vmax.f32 %v466_v19, 0.0 }
 0x1db   :  { %497 = vxpose.xlu0.b32.cont [8/16] %v481_v6, 128 }
 0x1df   :  { %498 = vxpose.xlu0.b32.cont [9/16] %v482_v9, 128 }
 0x1e3   :  { %499 = vxpose.xlu0.b32.cont [10/16] %v483_v10, 128  ;;  %v611_v10 = vpop.permute.xlu1 %610 }
 0x1e7   :  { %500 = vxpose.xlu0.b32.cont [11/16] %v484_v13, 128 }
 0x1eb   :  { %501 = vxpose.xlu0.b32.cont [12/16] %v485_v14, 128 }
 0x1ef   :  { %502 = vxpose.xlu0.b32.cont [13/16] %v486_v17, 128 }
 0x1f3   :  { %503 = vxpose.xlu0.b32.cont [14/16] %v487_v18, 128  ;;  %v616_v18 = vpop.permute.xlu1 %615 }
 0x1f7   :  { %504 = vxpose.xlu0.b32.cont [15/16] %v488_v21, 128 }
 0x1fb   :  { %505 = vxpose.xlu0.b32.end [16/16] %v489_v22, 128 }
 0x224   :  { %855 = vset.pattern.permute.xlu0 %v856_v34 }
 0x225   :  { %658 = vperm.xlu0 %855, %v655_v23  }
 0x23f   :  { %v506_v27 = vpop.trf.xlu0 }
 0x240   :  { %v618_v34 = vmul.f32 %v541_v24, %v506_v27 }
 0x243   :  { %v507_v29 = vpop.trf.xlu0 }
 0x244   :  { %v619_v43 = vmul.f32 %v546_v25, %v507_v29 }
 0x246   :  { %v634_v46 = vadd.f32 %v619_v43, %v618_v34 }
 0x247   :  { %v508_v31 = vpop.trf.xlu0 }
 0x248   :  { %v620_v47 = vmul.f32 %v551_v26, %v508_v31  ;;  %v661_v26 = vlaneseq }
 0x24a   :  { %v635_v49 = vadd.f32 %v634_v46, %v620_v47 }
 0x24b   :  { %v509_v32 = vpop.trf.xlu0 }
 0x24c   :  { %v621_v50 = vmul.f32 %v556_v28, %v509_v32  ;;  %v662_v28 = vshrl.u32 %v661_v26, 7 }
 0x24e   :  { %v636_v52 = vadd.f32 %v635_v49, %v621_v50 }
 0x24f   :  { %v510_v35 = vpop.trf.xlu0 }
 0x250   :  { %v622_v53 = vmul.f32 %v561_v30, %v510_v35  ;;  %v663_v30 = vsub.s32 0, %v662_v28 }
 0x252   :  { %v637_v56 = vadd.f32 %v636_v52, %v622_v53 }
 0x253   :  { %v511_v37 = vpop.trf.xlu0 }
 0x254   :  { %v623_v57 = vmul.f32 %v566_v33, %v511_v37 }
 0x256   :  { %v638_v59 = vadd.f32 %v637_v56, %v623_v57 }
 0x257   :  { %v512_v38 = vpop.trf.xlu0 }
 0x258   :  { %v624_v60 = vmul.f32 %v571_v36, %v512_v38 }
 0x25a   :  { %v639_v62 = vadd.f32 %v638_v59, %v624_v60 }
 0x25b   :  { %v513_v40 = vpop.trf.xlu0 }
 0x25c   :  { %v625_v63 = vmul.f32 %v576_v39, %v513_v40 }
 0x25e   :  { %v640_v3 = vadd.f32 %v639_v62, %v625_v63 }
 0x25f   :  { %v514_v42 = vpop.trf.xlu0 }
 0x260   :  { %v626_v1 = vmul.f32 %v581_v41, %v514_v42 }
 0x262   :  { %v641_v5 = vadd.f32 %v640_v3, %v626_v1 }
 0x263   :  { %v515_v44 = vpop.trf.xlu0 }
 0x264   :  { %v627_v4 = vmul.f32 %v586_v45, %v515_v44 }
 0x266   :  { %v642_v8 = vadd.f32 %v641_v5, %v627_v4 }
 0x267   :  { %v516_v48 = vpop.trf.xlu0 }
 0x268   :  { %v628_v6 = vmul.f32 %v591_v51, %v516_v48 }
 0x26a   :  { %v643_v11 = vadd.f32 %v642_v8, %v628_v6 }
 0x26b   :  { %v517_v54 = vpop.trf.xlu0 }
 0x26c   :  { %v629_v9 = vmul.f32 %v596_v55, %v517_v54 }
 0x26e   :  { %v644_v13 = vadd.f32 %v643_v11, %v629_v9 }
 0x26f   :  { %v518_v58 = vpop.trf.xlu0 }
 0x270   :  { %v630_v12 = vmul.f32 %v601_v61, %v518_v58 }
 0x272   :  { %v645_v16 = vadd.f32 %v644_v13, %v630_v12 }
 0x273   :  { %v519_v0 = vpop.trf.xlu0 }
 0x274   :  { %v631_v14 = vmul.f32 %v606_v2, %v519_v0 }
 0x276   :  { %v646_v19 = vadd.f32 %v645_v16, %v631_v14 }
 0x277   :  { %v520_v7 = vpop.trf.xlu0 }
 0x278   :  { %v632_v17 = vmul.f32 %v611_v10, %v520_v7 }
 0x27a   :  { %v647_v21 = vadd.f32 %v646_v19, %v632_v17 }
 0x27b   :  { %v521_v15 = vpop.trf.xlu0 }
 0x27c   :  { %v633_v20 = vmul.f32 %v616_v18, %v521_v15 }
 0x27e   :  { %v648_v22 = vadd.f32 %v647_v21, %v633_v20 }
 0x280   :  { %v649_v23 = vrot.slane %v648_v22, 4 }
 0x282   :  { %v650_v24 = vadd.f32 %v649_v23, %v648_v22 }
 0x284   :  { %v651_v25 = vrot.slane %v650_v24, 2 }
 0x286   :  { %v652_v27 = vadd.f32 %v651_v25, %v650_v24 }
 0x288   :  { %v653_v29 = vrot.slane %v652_v27, 1 }
 0x28a   :  { %v654_v32 = vadd.f32 %v653_v29, %v652_v27 }
 0x2a4   :  { %v659_v31 = vpop.permute.xlu0 %658 }
 0x2a5   :  { %v664_v33 = vrot.slane %v659_v31, %v663_v30 }
 0x2a7   :  { %v665_v35 = vadd.f32 %v664_v33, %v654_v32 }
 0x2a9   :  { %666 = vst [vmem:[%s1082_s7] sm:$0x1] %v665_v35 }

</bundles_post_ra>
